<compile_context>
chip_gen: v6e
topology: v6e:2x2x1
jax: 0.10.0
libtpu: 0.0.40
codegen_flags: <defaults>
</compile_context>

<pallas_src>
import functools

import jax
import jax.numpy as jnp
from jax.experimental import pallas as pl
from jax.experimental.pallas import tpu as pltpu


def _fused_conv_bn_relu_kernel(x_ref, w_ref, g_ref, b_ref, o_ref,
                               sum_ref, sumsq_ref, scale_ref, shift_ref,
                               *, hw, t_hw, inv_m, eps, bn, relu):
    """Two-pass fused 1x1-conv + train-mode BN + ReLU.

    Grid = (passes, N, HW tiles).  Pass 0 accumulates per-channel sum / sumsq
    of the conv output into VMEM scratch; pass 1 recomputes the conv tile and
    applies the folded scale/shift (+ReLU), writing the output directly.
    """
    p = pl.program_id(0)                 # 0 = stats pass, last = write pass
    n = pl.program_id(1)
    j = pl.program_id(2)
    last = pl.num_programs(0) - 1
    first_tile = (n == 0) & (j == 0)

    # (Cout, Cin) @ (Cin, t_hw) -> (Cout, t_hw), f32 accumulation on the MXU.
    y = jnp.dot(w_ref[...], x_ref[...], preferred_element_type=jnp.float32)

    if bn:
        @pl.when(p == 0)
        def _stats():
            @pl.when(first_tile)
            def _init():
                sum_ref[...] = jnp.zeros_like(sum_ref)
                sumsq_ref[...] = jnp.zeros_like(sumsq_ref)

            if hw % t_hw != 0:
                # Ragged tail tile: mask out-of-range columns from the stats.
                col = jax.lax.broadcasted_iota(jnp.int32, y.shape, 1)
                ys = jnp.where(j * t_hw + col < hw, y, 0.0)
            else:
                ys = y
            sum_ref[...] += jnp.sum(ys, axis=1, keepdims=True)
            sumsq_ref[...] += jnp.sum(ys * ys, axis=1, keepdims=True)

    @pl.when(p == last)
    def _write():
        if bn:
            @pl.when(first_tile)
            def _finalize():
                mean = sum_ref[...] * inv_m
                var = jnp.maximum(sumsq_ref[...] * inv_m - mean * mean, 0.0)
                sc = g_ref[...] * jax.lax.rsqrt(var + eps)
                scale_ref[...] = sc
                shift_ref[...] = b_ref[...] - mean * sc

            out = y * scale_ref[...] + shift_ref[...]
        else:
            out = y + b_ref[...]          # b_ref carries conv bias (or zeros)
        if relu:
            out = jnp.maximum(out, 0.0)
        o_ref[...] = out.astype(o_ref.dtype)


def conv_layer_forward(x_nchw, conv_weight, bn_gamma=None, bn_beta=None,
                       conv_bias=None, relu=True, bn=True, eps=1e-3,
                       tile_hw=2048, compute_dtype=jnp.float32):
    """Forward pass of ConvLayer with the module's default conv config.

    x_nchw:      (N, Cin, H, W)
    conv_weight: (Cout, Cin, 1, 1)
    bn_gamma/bn_beta: (Cout,)
    Returns (N, Cout, H, W) float32.
    """
    N, Cin, H, W = x_nchw.shape
    Cout, cin_w, kh, kw = conv_weight.shape
    assert cin_w == Cin and kh == 1 and kw == 1, (
        "only kernel_size=1, stride=1, padding=0, dilation=1, groups=1")
    # TODO(synk): general kernel_size/stride/padding/dilation/groups would need
    # im2col glue feeding the same matmul kernel.

    HW = H * W
    M = N * HW

    # NCHW -> (N, Cin, HW): pure reshape, no HBM transpose.
    x3d = x_nchw.reshape(N, Cin, HW).astype(compute_dtype)
    w2d = conv_weight.reshape(Cout, Cin).astype(compute_dtype)

    if bn:
        g = bn_gamma.reshape(Cout, 1).astype(jnp.float32)
        b = bn_beta.reshape(Cout, 1).astype(jnp.float32)
        # NB: a conv bias is cancelled exactly by train-mode BN mean
        # subtraction, so conv_bias needs no handling when bn=True.
    else:
        g = jnp.ones((Cout, 1), jnp.float32)
        b = (conv_bias.reshape(Cout, 1).astype(jnp.float32)
             if conv_bias is not None else jnp.zeros((Cout, 1), jnp.float32))

    # HW (lane) tile: as large as possible, multiple of 128 unless it spans the
    # whole axis, capped by a conservative double-buffered VMEM budget.
    in_bytes = jnp.dtype(compute_dtype).itemsize
    vmem_budget = 40 * 1024 * 1024

    def _need(t):
        return (2 * (t * Cin * in_bytes + t * Cout * 4)
                + 2 * Cin * Cout * in_bytes + 8 * Cout * 4)

    t_hw = min(tile_hw, HW)
    if t_hw < HW:
        t_hw = max(128, (t_hw // 128) * 128)
    while t_hw > 128 and _need(t_hw) > vmem_budget:
        t_hw = max(128, (t_hw // 2 // 128) * 128)

    n_hw = pl.cdiv(HW, t_hw)
    n_pass = 2 if bn else 1
    grid = (n_pass, N, n_hw)

    if bn:
        # Pass 0 pins output block (0,0,0) (never written -> never copied out);
        # pass 1 (p == 1) walks the real blocks.
        out_idx = lambda p, n, j: (n * p, 0, j * p)
    else:
        out_idx = lambda p, n, j: (n, 0, j)

    # Raise the scoped VMEM limit only when the tiles need it (v7x-safe cap).
    vmem_need = _need(t_hw) + (1 << 20)
    vmem_limit = None
    if vmem_need > 24 * 1024 * 1024:
        vmem_limit = min(int(vmem_need * 5 // 4) + (2 << 20), 56 * 1024 * 1024)

    kernel = functools.partial(
        _fused_conv_bn_relu_kernel,
        hw=HW, t_hw=t_hw, inv_m=float(1.0 / M), eps=float(eps),
        bn=bn, relu=relu)

    out3d = pl.pallas_call(
        kernel,
        out_shape=jax.ShapeDtypeStruct((N, Cout, HW), jnp.float32),
        grid_spec=pltpu.PrefetchScalarGridSpec(
            num_scalar_prefetch=0,
            grid=grid,
            in_specs=[
                pl.BlockSpec((None, Cin, t_hw), lambda p, n, j: (n, 0, j)),
                pl.BlockSpec((Cout, Cin), lambda p, n, j: (0, 0)),
                pl.BlockSpec((Cout, 1), lambda p, n, j: (0, 0)),
                pl.BlockSpec((Cout, 1), lambda p, n, j: (0, 0)),
            ],
            out_specs=pl.BlockSpec((None, Cout, t_hw), out_idx),
            scratch_shapes=[pltpu.VMEM((Cout, 1), jnp.float32)] * 4,
        ),
        compiler_params=pltpu.CompilerParams(
            # The cross-tile stats accumulator forces sequential grid axes.
            dimension_semantics=("arbitrary", "arbitrary", "arbitrary"),
            vmem_limit_bytes=vmem_limit),
    )(x3d, w2d, g, b)

    return out3d.reshape(N, Cout, H, W)


def _reference_forward(x, weight, gamma, beta, eps=1e-3):
    """Pure-JAX reference matching the PyTorch module (train-mode BN)."""
    y = jax.lax.conv_general_dilated(
        x, weight, window_strides=(1, 1), padding="VALID",
        dimension_numbers=("NCHW", "OIHW", "NCHW"))
    mean = jnp.mean(y, axis=(0, 2, 3), keepdims=True)
    var = jnp.var(y, axis=(0, 2, 3), keepdims=True)   # biased variance
    y = (y - mean) / jnp.sqrt(var + eps)
    y = y * gamma[None, :, None, None] + beta[None, :, None, None]
    return jnp.maximum(y, 0.0)


if __name__ == "__main__":
    key = jax.random.PRNGKey(0)
    kx, kw, kg, kb = jax.random.split(key, 4)

    N, Cin, H, W = 2, 4, 16, 16
    Cout = 8

    x = jax.random.normal(kx, (N, Cin, H, W), dtype=jnp.float32)
    # Deterministic synthetic parameters (no checkpoint):
    conv_weight = 0.1 * jax.random.normal(kw, (Cout, Cin, 1, 1), dtype=jnp.float32)
    bn_gamma = 1.0 + 0.1 * jax.random.normal(kg, (Cout,), dtype=jnp.float32)
    bn_beta = 0.1 * jax.random.normal(kb, (Cout,), dtype=jnp.float32)

    ref = _reference_forward(x, conv_weight, bn_gamma, bn_beta)

    out = conv_layer_forward(x, conv_weight, bn_gamma, bn_beta, relu=True, bn=True)
    out = jax.block_until_ready(out)
    assert out.shape == (N, Cout, H, W)
    assert jnp.allclose(out, ref, rtol=1e-4, atol=1e-4), (
        float(jnp.max(jnp.abs(out - ref))))

    # Multi-tile path (several HW tiles per image) exercises cross-tile stats
    # accumulation and the two-pass output-block pinning.
    out_tiled = conv_layer_forward(x, conv_weight, bn_gamma, bn_beta,
                                   relu=True, bn=True, tile_hw=128)
    out_tiled = jax.block_until_ready(out_tiled)
    assert jnp.allclose(out_tiled, ref, rtol=1e-4, atol=1e-4), (
        float(jnp.max(jnp.abs(out_tiled - ref))))

    print("KERNEL_OK")
</pallas_src>

<mosaic_0001>
module attributes {stable_mosaic.version = 11 : i64} {
  func.func @_fused_conv_bn_relu_kernel(%arg0: i32, %arg1: i32, %arg2: i32, %arg3: memref<1x4x256xf32, #tpu.memory_space<vmem>>, %arg4: memref<8x4xf32, #tpu.memory_space<vmem>>, %arg5: memref<8x1xf32, #tpu.memory_space<vmem>>, %arg6: memref<8x1xf32, #tpu.memory_space<vmem>>, %arg7: memref<1x8x256xf32, #tpu.memory_space<vmem>>, %arg8: memref<8x1xf32, #tpu.memory_space<vmem>>, %arg9: memref<8x1xf32, #tpu.memory_space<vmem>>, %arg10: memref<8x1xf32, #tpu.memory_space<vmem>>, %arg11: memref<8x1xf32, #tpu.memory_space<vmem>>) attributes {dimension_semantics = [#tpu.dimension_semantics<arbitrary>, #tpu.dimension_semantics<arbitrary>, #tpu.dimension_semantics<arbitrary>], iteration_bounds = array<i64: 2, 2, 1>, scalar_prefetch = 0 : i64, scratch_operands = 4 : i64, tpu.core_type = #tpu.core_type<tc>, window_params = [{transform_indices = @transform_0, window_bounds = array<i64: 1, 4, 256>}, {pipeline_mode = #tpu.pipeline_mode<synchronous>, transform_indices = @transform_1, window_bounds = array<i64: 8, 4>}, {pipeline_mode = #tpu.pipeline_mode<synchronous>, transform_indices = @transform_2, window_bounds = array<i64: 8, 1>}, {pipeline_mode = #tpu.pipeline_mode<synchronous>, transform_indices = @transform_3, window_bounds = array<i64: 8, 1>}, {transform_indices = @transform_4, window_bounds = array<i64: 1, 8, 256>}]} {
    %c0_i32 = arith.constant 0 : i32
    %0 = arith.cmpi eq, %arg1, %c0_i32 : i32
    %c0_i32_0 = arith.constant 0 : i32
    %1 = arith.cmpi eq, %arg2, %c0_i32_0 : i32
    %2 = arith.andi %0, %1 : i1
    %c0 = arith.constant 0 : index
    %c0_1 = arith.constant 0 : index
    %3 = vector.load %arg4[%c0, %c0_1] : memref<8x4xf32, #tpu.memory_space<vmem>>, vector<8x4xf32>
    %c0_2 = arith.constant 0 : index
    %c0_3 = arith.constant 0 : index
    %c0_4 = arith.constant 0 : index
    %4 = vector.load %arg3[%c0_2, %c0_3, %c0_4] : memref<1x4x256xf32, #tpu.memory_space<vmem>>, vector<1x4x256xf32>
    %5 = vector.shape_cast %4 : vector<1x4x256xf32> to vector<4x256xf32>
    %cst = arith.constant dense<0.000000e+00> : vector<8x256xf32>
    %6 = tpu.matmul %3, %5, %cst {dimension_numbers = #tpu.dot_dimension_numbers<[1], [0], [0], [1], [0, 0, 1, 1], [], []>} : vector<8x4xf32>, vector<4x256xf32>, vector<8x256xf32> -> vector<8x256xf32>
    %c0_i32_5 = arith.constant 0 : i32
    %7 = arith.cmpi eq, %arg0, %c0_i32_5 : i32
    %8 = arith.extui %7 : i1 to i32
    %c0_i32_6 = arith.constant 0 : i32
    %9 = arith.cmpi ne, %8, %c0_i32_6 : i32
    scf.if %9 {
      %13 = arith.extui %2 : i1 to i32
      %c0_i32_8 = arith.constant 0 : i32
      %14 = arith.cmpi ne, %13, %c0_i32_8 : i32
      scf.if %14 {
        %cst_19 = arith.constant 0.000000e+00 : f32
        %26 = vector.broadcast %cst_19 : f32 to vector<8x1xf32>
        %c0_20 = arith.constant 0 : index
        %c0_21 = arith.constant 0 : index
        %27 = vector.load %arg8[%c0_20, %c0_21] : memref<8x1xf32, #tpu.memory_space<vmem>>, vector<8x1xf32>
        tpu.vector_store %arg8[%c0_20, %c0_21], %26 {strides = array<i32>} : memref<8x1xf32, #tpu.memory_space<vmem>>, vector<8x1xf32>,
        %cst_22 = arith.constant 0.000000e+00 : f32
        %28 = vector.broadcast %cst_22 : f32 to vector<8x1xf32>
        %c0_23 = arith.constant 0 : index
        %c0_24 = arith.constant 0 : index
        %29 = vector.load %arg9[%c0_23, %c0_24] : memref<8x1xf32, #tpu.memory_space<vmem>>, vector<8x1xf32>
        tpu.vector_store %arg9[%c0_23, %c0_24], %28 {strides = array<i32>} : memref<8x1xf32, #tpu.memory_space<vmem>>, vector<8x1xf32>,
      } else {
      }
      %c0_9 = arith.constant 0 : index
      %c0_10 = arith.constant 0 : index
      %15 = vector.load %arg8[%c0_9, %c0_10] : memref<8x1xf32, #tpu.memory_space<vmem>>, vector<8x1xf32>
      %cst_11 = arith.constant dense<0.000000e+00> : vector<8xf32>
      %16 = vector.multi_reduction <add>, %6, %cst_11 [1] : vector<8x256xf32> to vector<8xf32>
      %17 = vector.shape_cast %16 : vector<8xf32> to vector<8x1xf32>
      %18 = arith.addf %15, %17 : vector<8x1xf32>
      %c0_12 = arith.constant 0 : index
      %c0_13 = arith.constant 0 : index
      %19 = vector.load %arg8[%c0_12, %c0_13] : memref<8x1xf32, #tpu.memory_space<vmem>>, vector<8x1xf32>
      tpu.vector_store %arg8[%c0_12, %c0_13], %18 {strides = array<i32>} : memref<8x1xf32, #tpu.memory_space<vmem>>, vector<8x1xf32>,
      %c0_14 = arith.constant 0 : index
      %c0_15 = arith.constant 0 : index
      %20 = vector.load %arg9[%c0_14, %c0_15] : memref<8x1xf32, #tpu.memory_space<vmem>>, vector<8x1xf32>
      %21 = arith.mulf %6, %6 : vector<8x256xf32>
      %cst_16 = arith.constant dense<0.000000e+00> : vector<8xf32>
      %22 = vector.multi_reduction <add>, %21, %cst_16 [1] : vector<8x256xf32> to vector<8xf32>
      %23 = vector.shape_cast %22 : vector<8xf32> to vector<8x1xf32>
      %24 = arith.addf %20, %23 : vector<8x1xf32>
      %c0_17 = arith.constant 0 : index
      %c0_18 = arith.constant 0 : index
      %25 = vector.load %arg9[%c0_17, %c0_18] : memref<8x1xf32, #tpu.memory_space<vmem>>, vector<8x1xf32>
      tpu.vector_store %arg9[%c0_17, %c0_18], %24 {strides = array<i32>} : memref<8x1xf32, #tpu.memory_space<vmem>>, vector<8x1xf32>,
    } else {
    }
    %c1_i32 = arith.constant 1 : i32
    %10 = arith.cmpi eq, %arg0, %c1_i32 : i32
    %11 = arith.extui %10 : i1 to i32
    %c0_i32_7 = arith.constant 0 : i32
    %12 = arith.cmpi ne, %11, %c0_i32_7 : i32
    scf.if %12 {
      %13 = arith.extui %2 : i1 to i32
      %c0_i32_8 = arith.constant 0 : i32
      %14 = arith.cmpi ne, %13, %c0_i32_8 : i32
      scf.if %14 {
        %c0_17 = arith.constant 0 : index
        %c0_18 = arith.constant 0 : index
        %26 = vector.load %arg8[%c0_17, %c0_18] : memref<8x1xf32, #tpu.memory_space<vmem>>, vector<8x1xf32>
        %cst_19 = arith.constant 0.001953125 : f32
        %27 = vector.broadcast %cst_19 : f32 to vector<8x1xf32>
        %28 = arith.mulf %26, %27 : vector<8x1xf32>
        %c0_20 = arith.constant 0 : index
        %c0_21 = arith.constant 0 : index
        %29 = vector.load %arg9[%c0_20, %c0_21] : memref<8x1xf32, #tpu.memory_space<vmem>>, vector<8x1xf32>
        %cst_22 = arith.constant 0.001953125 : f32
        %30 = vector.broadcast %cst_22 : f32 to vector<8x1xf32>
        %31 = arith.mulf %29, %30 : vector<8x1xf32>
        %32 = arith.mulf %28, %28 : vector<8x1xf32>
        %33 = arith.subf %31, %32 : vector<8x1xf32>
        %cst_23 = arith.constant 0.000000e+00 : f32
        %34 = vector.broadcast %cst_23 : f32 to vector<8x1xf32>
        %35 = arith.maximumf %33, %34 : vector<8x1xf32>
        %c0_24 = arith.constant 0 : index
        %c0_25 = arith.constant 0 : index
        %36 = vector.load %arg5[%c0_24, %c0_25] : memref<8x1xf32, #tpu.memory_space<vmem>>, vector<8x1xf32>
        %cst_26 = arith.constant 1.000000e-03 : f32
        %37 = vector.broadcast %cst_26 : f32 to vector<8x1xf32>
        %38 = arith.addf %35, %37 : vector<8x1xf32>
        %39 = math.rsqrt %38 : vector<8x1xf32>
        %40 = arith.mulf %36, %39 : vector<8x1xf32>
        %c0_27 = arith.constant 0 : index
        %c0_28 = arith.constant 0 : index
        %41 = vector.load %arg10[%c0_27, %c0_28] : memref<8x1xf32, #tpu.memory_space<vmem>>, vector<8x1xf32>
        tpu.vector_store %arg10[%c0_27, %c0_28], %40 {strides = array<i32>} : memref<8x1xf32, #tpu.memory_space<vmem>>, vector<8x1xf32>,
        %c0_29 = arith.constant 0 : index
        %c0_30 = arith.constant 0 : index
        %42 = vector.load %arg6[%c0_29, %c0_30] : memref<8x1xf32, #tpu.memory_space<vmem>>, vector<8x1xf32>
        %43 = arith.mulf %28, %40 : vector<8x1xf32>
        %44 = arith.subf %42, %43 : vector<8x1xf32>
        %c0_31 = arith.constant 0 : index
        %c0_32 = arith.constant 0 : index
        %45 = vector.load %arg11[%c0_31, %c0_32] : memref<8x1xf32, #tpu.memory_space<vmem>>, vector<8x1xf32>
        tpu.vector_store %arg11[%c0_31, %c0_32], %44 {strides = array<i32>} : memref<8x1xf32, #tpu.memory_space<vmem>>, vector<8x1xf32>,
      } else {
      }
      %c0_9 = arith.constant 0 : index
      %c0_10 = arith.constant 0 : index
      %15 = vector.load %arg10[%c0_9, %c0_10] : memref<8x1xf32, #tpu.memory_space<vmem>>, vector<8x1xf32>
      %16 = vector.broadcast %15 : vector<8x1xf32> to vector<8x256xf32>
      %17 = arith.mulf %6, %16 : vector<8x256xf32>
      %c0_11 = arith.constant 0 : index
      %c0_12 = arith.constant 0 : index
      %18 = vector.load %arg11[%c0_11, %c0_12] : memref<8x1xf32, #tpu.memory_space<vmem>>, vector<8x1xf32>
      %19 = vector.broadcast %18 : vector<8x1xf32> to vector<8x256xf32>
      %20 = arith.addf %17, %19 : vector<8x256xf32>
      %cst_13 = arith.constant 0.000000e+00 : f32
      %21 = vector.broadcast %cst_13 : f32 to vector<8x256xf32>
      %22 = arith.maximumf %20, %21 : vector<8x256xf32>
      %c0_14 = arith.constant 0 : index
      %c0_15 = arith.constant 0 : index
      %c0_16 = arith.constant 0 : index
      %23 = vector.load %arg7[%c0_14, %c0_15, %c0_16] : memref<1x8x256xf32, #tpu.memory_space<vmem>>, vector<1x8x256xf32>
      %24 = vector.shape_cast %23 : vector<1x8x256xf32> to vector<8x256xf32>
      %25 = vector.shape_cast %22 : vector<8x256xf32> to vector<1x8x256xf32>
      tpu.vector_store %arg7[%c0_14, %c0_15, %c0_16], %25 {strides = array<i32>} : memref<1x8x256xf32, #tpu.memory_space<vmem>>, vector<1x8x256xf32>,
    } else {
    }
    return
  }
  func.func @transform_0(%arg0: i32, %arg1: i32, %arg2: i32) -> (i32, i32, i32) {
    %c0_i32 = arith.constant 0 : i32
    %c0_i32_0 = arith.constant 0 : i32
    return %arg1, %c0_i32, %arg2 : i32, i32, i32
  }
  func.func @transform_1(%arg0: i32, %arg1: i32, %arg2: i32) -> (i32, i32) {
    %c0_i32 = arith.constant 0 : i32
    %c0_i32_0 = arith.constant 0 : i32
    %c0_i32_1 = arith.constant 0 : i32
    return %c0_i32, %c0_i32_0 : i32, i32
  }
  func.func @transform_2(%arg0: i32, %arg1: i32, %arg2: i32) -> (i32, i32) {
    %c0_i32 = arith.constant 0 : i32
    %c0_i32_0 = arith.constant 0 : i32
    %c0_i32_1 = arith.constant 0 : i32
    return %c0_i32, %c0_i32_0 : i32, i32
  }
  func.func @transform_3(%arg0: i32, %arg1: i32, %arg2: i32) -> (i32, i32) {
    %c0_i32 = arith.constant 0 : i32
    %c0_i32_0 = arith.constant 0 : i32
    %c0_i32_1 = arith.constant 0 : i32
    return %c0_i32, %c0_i32_0 : i32, i32
  }
  func.func @transform_4(%arg0: i32, %arg1: i32, %arg2: i32) -> (i32, i32, i32) {
    %0 = arith.muli %arg1, %arg0 : i32
    %1 = arith.muli %arg2, %arg0 : i32
    %c0_i32 = arith.constant 0 : i32
    %c0_i32_0 = arith.constant 0 : i32
    return %0, %c0_i32, %1 : i32, i32, i32
  }
}

</mosaic_0001>

<bundles_post_ra>
// kernel: tpu_custom_call.1
= control target key start
LH: loop header
LB: loop body
LE: loop exit
PB: predicated region body
PF: predicated region fallthrough
CT: control target
= control target key end

     0   :  { %9 = vsyncpa [#allocation7], 0  ;;  %s866_s0 = inlined_call_operand.vmem [shape: f32[2,4,256], index: 0, kind: input, shape index: {}]   ;;  %s867_s1 = inlined_call_operand.vmem [shape: f32[8,4], index: 1, kind: input, shape index: {}]   ;;  %s868_s2 = inlined_call_operand.vmem [shape: f32[8,1], index: 2, kind: input, shape index: {}]   ;;  %s869_s3 = inlined_call_operand.vmem [shape: f32[8,1], index: 3, kind: input, shape index: {}]   ;;  %s870_s4 = inlined_call_operand.hbm [shape: f32[2,8,256], index: 4, kind: output, shape index: {}]  }
   0x1   :  { %11 = vsyncpa [#allocation7 + $0x1], 0  ;;  %s719_s15 = smov 0   ;;  %s721_s16 = smov 0  }
   0x2   :  { %s723_s17 = smov 0   ;;  %s725_s18 = smov 0  }
   0x3   :  { %s727_s19 = smov 0   ;;  %s729_s20 = smov 0  }
   0x4   :  { %s731_s21 = smov 0   ;;  %s733_s22 = smov 0  }
   0x5 LB: > { %s496_s23 = sadd.s32 4294967295, %s688_s22   ;;  %s497_s24 = sadd.s32 4294967294, %s688_s22   ;;  %s688_s22 = sphi %s733_s22, %s17_s22   ;;  %s684_s21 = sphi %s731_s21, %s879_s21   ;;  %s680_s20 = sphi %s729_s20, %s878_s20   ;;  %s676_s19 = sphi %s727_s19, %s877_s19   ;;  %s672_s18 = sphi %s725_s18, %s876_s18   ;;  %s668_s17 = sphi %s723_s17, %s875_s17   ;;  %s664_s16 = sphi %s721_s16, %s874_s16   ;;  %s660_s15 = sphi %s719_s15, %s873_s15  }
   0x6   : > { %s32_s25 = sadd.s32 1, %s680_s20  ;;  %s36_s26 = sadd.s32 1, %s684_s21 }
   0x7   : > { %p34_p0 = scmp.ge.s32.totalorder %s32_s25, 2  ;;  %s131_s27 = smul.u32 %s680_s20, %s684_s21 }
   0x8   : > { %p150_p1 = scmp.ne.s32.totalorder %s668_s17, %s664_s16  ;;  %p151_p2 = scmp.eq.s32.totalorder %s496_s23, 3 }
   0x9   : > { %s881_s25 = smov (%p34_p0, %s32_s25), 0  ;;  %s883_s26 = smov (!%p34_p0, %s36_s26), %s684_s21 }
   0xa   : > { %p156_p3 = scmp.ne.s32.totalorder %s664_s16, %s660_s15  ;;  %p38_p4 = scmp.ge.s32.totalorder %s883_s26, 2 }
   0xb   : > { %p157_p5 = scmp.eq.s32.totalorder %s497_s24, 3  ;;  %p772_p6 = por %p151_p2, %p150_p1 }
   0xc   : > { %p500_p7 = scmp.ge.s32.totalorder %s688_s22, 1  ;;  %s885_s26 = smov (%p38_p4, %s883_s26), 0 }
   0xd   : > { %p779_p8 = por %p157_p5, %p156_p3  ;;  %p197_p9 = scmp.lt.s32.totalorder %s688_s22, 5 }
   0xe   : > { %s133_s30 = smul.u32 %s885_s26, %s881_s25  ;;  %s140_s6 = sadd.s32 1, %s668_s17 }
   0xf   : > { %p198_p10 = pnand %p500_p7, %p197_p9 }
  0x10   : > { %s135_s5 = ssub.s32 %s131_s27, %s133_s30  ;;  %s224_s8 = sand.u32 (!%p198_p10), 1, %s664_s16  }
  0x11   : > { %p138_p11 = scmp.eq.s32.totalorder %s135_s5, 0  ;;  %201 = sbr.rel (%p198_p10) target bundleno = 577 (0x241), region = 36 }
  0x12   : > { %p228_p12 = scmp.lt.s32.totalorder (!%p198_p10), %s672_s18, 1  ;;  %s501_s9 = sshll.u32 (!%p198_p10), %s224_s8, 4 }
  0x13   : > { %s788_s7 = scalar_select %p138_p11, %s668_s17, %s140_s6  }
  0x14   : > { %p240_p13 = scmp.eq.s32.totalorder (!%p198_p10), %s672_s18, 0  ;;  %s802_s27 = scalar_lea.vmem (!%p198_p10), [#allocation6], %s501_s9 }
  0x15   : > { %p508_p0 = scmp.ne.s32.totalorder (!%p198_p10), %s676_s19, 0 }
  0x16   : > { %v690_v0 = vmov 0.0   ;;  %s229_s10 = scalar_select %p228_p12, %s672_s18, 1  ;;  %vm252_vm0 = vcmask 1043456   ;;  %v244_v3 = vld [vmem:[%s867_s1] sm:$0xff]  ;;  %vm248_vm1 = vcmask 31744  }
  0x17   : > { %321 = vmatprep.mubr.f32.mxu0 %v690_v0 }
  0x18   : > { %s515_s11 = sshll.u32 %s229_s10, 3 }
  0x19   : > { %s235_s14 = scalar_lea.vmem %s866_s0, %s515_s11 }
  0x1a   : > { %v245_v1 = vld [vmem:[%s235_s14] sm:$0xff] }
  0x1b   : > { %v247_v2 = vcombine.high %v245_v1, %v245_v1 }
  0x1d   : > { %505 = vmatprep.subr.msk.mxu0 %vm252_vm0, %v247_v2 }
  0x1e   : > { %506 = vmatpush1.msk.msra.mxu0 %vm252_vm0, %v245_v1 }
  0x1f   : > { %507 = vmatmul.mubr.msk.f32.vlgmr.msra.gmra.mxu0 %vm248_vm1, %v244_v3 }
  0xdd   : > { %331 = sbr.rel (%p508_p0) target bundleno = 378 (0x17a), region = 40 }
  0xdf   : > { %v323_v4 = vpop.f32.mrf.mxu0 }
  0xe1   : > { %v325_v5 = vpop.f32.mrf.mxu0 }
  0xe2   : > { %333 = sbr.rel (!%p240_p13) target bundleno = 231 (0xe7), region = 44  ;;  %vm334_vm2 = vcmask (%p240_p13), 7168   ;;  %v691_v6 = vmov (%p240_p13), 0.0  }
  0xe3   : > { %335 = vst.msk [vmem:[#allocation2] sm:$0xff] (%p240_p13), %vm334_vm2, %v691_v6  ;;  %336 = vst.msk [vmem:[#allocation3] sm:$0xff] (%p240_p13), %vm334_vm2, %v691_v6 }
  0xe7 PF: > { %v338_v7 = vadd.f32 %v325_v5, %v323_v4  ;;  %v345_v8 = vmul.f32 %v323_v4, %v323_v4  ;;  %v346_v9 = vmul.f32 %v325_v5, %v325_v5  ;;  %vm342_vm3 = vcmask 7168  }
  0xe9   : > { %339 = vadd.xlane.f32.xlu0 %v338_v7  ;;  %v347_v10 = vadd.f32 %v346_v9, %v345_v8 }
  0xea   : > { %v337_v11 = vld [vmem:[#allocation2] sm:$0xff]  ;;  %v344_v14 = vld [vmem:[#allocation3] sm:$0xff] }
  0xed   : > { %348 = vadd.xlane.f32.xlu0 %v347_v10 }
 0x172   : > { %v340_v12 = vpop.xlane.xlu0 %339 }
 0x173   : > { %v341_v13 = vadd.f32 %v340_v12, %v337_v11 }
 0x175   : > { %343 = vst.msk [vmem:[#allocation2] sm:$0xff] %vm342_vm3, %v341_v13 }
 0x176   : > { %v349_v15 = vpop.xlane.xlu0 %348 }
 0x177   : > { %v350_v16 = vadd.f32 %v349_v15, %v344_v14 }
 0x179   : > { %351 = vst.msk [vmem:[#allocation3] sm:$0xff] %vm342_vm3, %v350_v16 }
 0x17a PF: > { %p509_p1 = scmp.ne.s32.totalorder %s676_s19, 1 }
 0x17c   : > { %355 = sbr.rel (%p509_p1) target bundleno = 553 (0x229), region = 48 }
 0x181   : > { %357 = sbr.rel (!%p240_p13) target bundleno = 417 (0x1a1), region = 52  ;;  %v358_v17 = vld [vmem:[#allocation2] sm:$0xff] (%p240_p13)  ;;  %v360_v18 = vld [vmem:[#allocation3] sm:$0xff] (%p240_p13)  ;;  %vm369_vm4 = vcmask (%p240_p13), 7168  }
 0x182   : > { %v359_v19 = vmul.f32 (%p240_p13), 0.001953125, %v358_v17  ;;  %v361_v20 = vmul.f32 (%p240_p13), 0.001953125, %v360_v18  ;;  %v365_v25 = vld [vmem:[%s868_s2] sm:$0xff] (%p240_p13) }
 0x183   : > { %v371_v28 = vld [vmem:[%s869_s3] sm:$0xff] (%p240_p13) }
 0x184   : > { %v362_v21 = vmul.f32 (%p240_p13), %v359_v19, %v359_v19 }
 0x186   : > { %v363_v22 = vsub.f32 %v361_v20, %v362_v21 }
 0x188   : > { %v364_v23 = vmax.f32 %v363_v22, 0.0 }
 0x18a   : > { %v366_v24 = vadd.f32 0.001, %v364_v23 }
 0x18c   : > { %593 = vrsqrt.f32 %v366_v24 }
 0x199   : > { %v594_v26 = vpop.eup %593 }
 0x19a   : > { %v368_v27 = vmul.f32 %v594_v26, %v365_v25 }
 0x19c   : > { %370 = vst.msk [vmem:[#allocation4] sm:$0xff] %vm369_vm4, %v368_v27  ;;  %v372_v29 = vmul.f32 %v368_v27, %v359_v19 }
 0x19e   : > { %v373_v30 = vsub.f32 %v371_v28, %v372_v29 }
 0x1a0   : > { %374 = vst.msk [vmem:[#allocation5] sm:$0xff] %vm369_vm4, %v373_v30 }
 0x1a1 PF: > { %v692_v32 = vmov 0  }
 0x1a2   : > { %595 = vset.pattern.permute.xlu0 %v692_v32 }
 0x1a3   : > { %v375_v31 = vld [vmem:[#allocation4] sm:$0xff] }
 0x1a4   : > { %378 = vperm.xlu0 %595, %v375_v31  }
 0x1a7   : > { %v383_v33 = vld [vmem:[#allocation5] sm:$0xff] }
 0x1a8   : > { %386 = vperm.xlu0 %595, %v383_v33  }
 0x21f   : > { %v379_v34 = vpop.permute.xlu0 %378 }
 0x220   : > { %v381_v35 = vmul.f32 %v379_v34, %v323_v4  ;;  %v382_v36 = vmul.f32 %v379_v34, %v325_v5 }
 0x223   : > { %v387_v37 = vpop.permute.xlu0 %386 }
 0x224   : > { %v389_v38 = vadd.f32 %v387_v37, %v381_v35  ;;  %v390_v39 = vadd.f32 %v387_v37, %v382_v36 }
 0x226   : > { %v391_v40 = vmax.f32 %v389_v38, 0.0  ;;  %v392_v41 = vmax.f32 %v390_v39, 0.0 }
 0x228   : > { %393 = vst [vmem:[%s802_s27] sm:$0xff] %v391_v40  ;;  %394 = vst [vmem:[%s802_s27 + $0x8] sm:$0xff] %v392_v41 }
 0x229 PF: > { %s403_s10 = smul.u32 %s672_s18, %s676_s19  ;;  %s414_s11 = sshll.u32 %s802_s27, 4  ;;  %s415_s11 = int_to_ptr.vmem [resolvable:$true] %s414_s11 }
 0x22a   : > { %s396_s24 = scalar_lea.sflag [#allocation7], %s224_s8  ;;  %s596_s30 = scalar_lea.vmem %s415_s11, 256 }
 0x22b   : > { %s517_s12 = sshll.u32 %s403_s10, 8  ;;  %p597_p2 = scmp.ne.s32.totalorder %s415_s11, %s596_s30 }
 0x22c   : > { %s412_s23 = scalar_lea.hbm %s870_s4, %s517_s12  ;;  %s693_s5 = smov [#allocation6]  }
 0x22d   : > { %p598_p3 = pnand %p597_p2, %p772_p6  ;;  %s600_s6 = sshll.u32 %s693_s5, 4  ;;  %s601_s6 = int_to_ptr.vmem [resolvable:$false] %s600_s6 }
 0x22e   : > { %s602_s9 = scalar_lea.vmem %s601_s6, 512  ;;  %p603_p5 = scmp.lt.s32.totalorder %s415_s11, %s601_s6 }
 0x22f   : > { %p599_p4 = pneg %p598_p3  ;;  %p604_p7 = scmp.lt.s32.totalorder %s602_s9, %s596_s30 }
 0x231   : > { %p605_p9 = por %p604_p7, %p603_p5 }
 0x233   : > { %p606_p10 = pnand %p605_p9, %p599_p4 }
 0x235   : > { %609 = shalt.err (!%p606_p10)
}
 0x236   : > { %s610_s18 = scalar_lea.hbm %s412_s23, 256  ;;  %s614_s27 = scalar_lea.hbm %s870_s4, 512 }
 0x237   : > { %p611_p11 = scmp.ne.s32.totalorder %s412_s23, %s610_s18  ;;  %p615_p0 = scmp.lt.s32.totalorder %s412_s23, %s870_s4 }
 0x238   : > { %p616_p1 = scmp.lt.s32.totalorder %s614_s27, %s610_s18 }
 0x239   : > { %p612_p12 = pnand %p611_p11, %p772_p6 }
 0x23a   : > { %p617_p2 = por %p616_p1, %p615_p0 }
 0x23b   : > { %p613_p13 = pneg %p612_p12 }
 0x23d   : > { %p618_p3 = pnand %p617_p2, %p613_p13 }
 0x23f   : > { %621 = shalt.err (!%p618_p3)
}
 0x240   : > { %518 = dma.vmem_to_hbm [thread:$0]  (%p772_p6), %s415_s11, 256, %s412_s23, %s396_s24  }
 0x241 PF: > { %p524_p4 = scmp.ge.s32.totalorder %s688_s22, 2  ;;  %s426_s13 = sand.u32 1, %s660_s15  }
 0x242   : > { %s427_s14 = scalar_lea.sflag [#allocation7], %s426_s13 }
 0x243   : > { %p521_p5 = pnand %p524_p4, %p779_p8 }
 0x245   : > { %p522_p7 = pneg %p521_p5 }
 0x247   : > { %655 = dma.done.wait (%p522_p7), %s427_s14, 256  }
 0x248   : > { %657 = vsyncadd (%p522_p7), %s427_s14, 4294967040  ;;  %s17_s22 = sadd.s32 1, %s688_s22   ;;  %s873_s15 = smov %s664_s16 }
 0x249   : > { %p14_p9 = scmp.ge.s32.totalorder %s17_s22, 6   ;;  %s874_s16 = smov %s668_s17 }
 0x24a   : > { %s875_s17 = smov %s788_s7  ;;  %s876_s18 = smov %s680_s20 }
 0x24b   : > { %s877_s19 = smov %s684_s21  ;;  %s878_s20 = smov %s881_s25 }
 0x24c   : > { %s879_s21 = smov %s885_s26  ;;  %16 = sbr.rel (!%p14_p9) target bundleno = 5 (0x5), region = 87 }
 0x251   :  { %432 = vsyncpa [#allocation7], 1 }
 0x252   :  { %434 = vsyncpa [#allocation7 + $0x1], 1 }

</bundles_post_ra>
